<compile_context>
chip_gen: v7x
topology: tpu7x:2x2x1
jax: 0.10.0
libtpu: 0.0.40
codegen_flags: <defaults>
</compile_context>

<pallas_src>
import jax
import jax.numpy as jnp
from jax import lax
from jax.experimental import pallas as pl
from jax.experimental.pallas import tpu as pltpu

EPS = 1e-6


def _final_layer_kernel(shift_ref, scale_ref, x_ref, w_ref, b_ref, o_ref):
    # ---- LayerNorm (no affine, eps=1e-6) over hidden dim, one-pass stats ----
    x = x_ref[0].astype(jnp.float32)                        # (TN, H)
    inv_h = 1.0 / x.shape[-1]
    s = jnp.sum(x, axis=-1, keepdims=True)
    sq = jnp.sum(x * x, axis=-1, keepdims=True)
    mean = s * inv_h
    var = sq * inv_h - mean * mean
    xn = (x - mean) * lax.rsqrt(var + EPS)                  # (TN, H)

    # ---- FiLM modulate (shift/scale precomputed per batch in the wrapper) ---
    shift = shift_ref[0].astype(jnp.float32)                # (1, H)
    scale = scale_ref[0].astype(jnp.float32)                # (1, H)
    xm = xn * (1.0 + scale) + shift                         # (TN, H)

    # ---- final projection into a lane-dense (multiple-of-128) padded output -
    out = jnp.dot(xm.astype(w_ref.dtype), w_ref[...],
                  preferred_element_type=jnp.float32)
    out = out + b_ref[...].astype(jnp.float32)              # (TN, P)
    o_ref[0] = out.astype(o_ref.dtype)


def final_layer(x, c, w_mod, b_mod, w_lin, b_lin, *,
                token_tile=512, return_padded=False):
    """FinalLayer forward.

    x:     (B, N, H) tokens (f32 or bf16; bf16 is the fast, HBM-light path)
    c:     (B, H)    conditioning
    w_mod: (H, 2H), b_mod: (2H,)  -- adaLN_modulation Linear ((in, out) layout)
    w_lin: (H, C),  b_lin: (C,)   -- final Linear            ((in, out) layout)
    Returns (B, N, C) in x.dtype (or the padded (B, N, P) buffer if
    return_padded=True, so the consumer can fold the channel slice).
    """
    B, N, H = x.shape
    C = w_lin.shape[1]
    out_dtype = x.dtype

    # ---- adaLN modulation hoisted out of the kernel (tiny matmul, f32) ------
    c32 = c.astype(jnp.float32)
    c_act = c32 * jax.nn.sigmoid(c32)                               # SiLU
    mod = c_act @ w_mod.astype(jnp.float32) + b_mod.astype(jnp.float32)  # (B, 2H)
    shift = mod[:, :H].reshape(B, 1, H)                             # (B, 1, H) f32
    scale = mod[:, H:].reshape(B, 1, H)                             # (B, 1, H) f32

    # ---- pad output channels to a lane-dense multiple of 128 ----------------
    P = pl.cdiv(C, 128) * 128
    w_lin_p = jnp.zeros((H, P), w_lin.dtype).at[:, :C].set(w_lin)
    b_lin_p = jnp.zeros((1, P), jnp.float32).at[:, :C].set(b_lin.astype(jnp.float32))

    # ---- token (row) tile: multiple of 8 sublanes, no x padding (ragged grid)
    if token_tile >= N:
        TN = N
    else:
        TN = max(8, (token_tile // 8) * 8)
    num_t = pl.cdiv(N, TN)
    # v7x dual-TC: keep at least 2 parallel grid points when there is enough work.
    if B * num_t < 2 and N >= 16:
        TN = ((pl.cdiv(N, 2) + 7) // 8) * 8
        num_t = pl.cdiv(N, TN)

    grid = (B, num_t)
    const = lambda shape: pl.BlockSpec(shape, lambda b, t: (0,) * len(shape))

    out = pl.pallas_call(
        _final_layer_kernel,
        out_shape=jax.ShapeDtypeStruct((B, N, P), out_dtype),
        grid=grid,
        in_specs=[
            pl.BlockSpec((1, 1, H), lambda b, t: (b, 0, 0)),      # shift
            pl.BlockSpec((1, 1, H), lambda b, t: (b, 0, 0)),      # scale
            pl.BlockSpec((1, TN, H), lambda b, t: (b, t, 0)),     # x tile
            const((H, P)),                                        # w_lin (padded)
            const((1, P)),                                        # b_lin (padded)
        ],
        out_specs=pl.BlockSpec((1, TN, P), lambda b, t: (b, t, 0)),
        compiler_params=pltpu.CompilerParams(
            dimension_semantics=("parallel", "parallel")),
    )(shift, scale, x, w_lin_p, b_lin_p)

    if return_padded:
        return out
    return out[:, :, :C]


def _reference(x, c, w_mod, b_mod, w_lin, b_lin):
    """Pure-JAX f32 reference matching the PyTorch FinalLayer."""
    x = x.astype(jnp.float32)
    c = c.astype(jnp.float32)
    w_mod = w_mod.astype(jnp.float32)
    b_mod = b_mod.astype(jnp.float32)
    w_lin = w_lin.astype(jnp.float32)
    b_lin = b_lin.astype(jnp.float32)
    H = x.shape[-1]
    c_act = c * jax.nn.sigmoid(c)                  # SiLU
    mod = c_act @ w_mod + b_mod                    # (B, 2H)
    shift, scale = mod[:, :H], mod[:, H:]
    mean = x.mean(-1, keepdims=True)
    var = ((x - mean) ** 2).mean(-1, keepdims=True)
    xn = (x - mean) / jnp.sqrt(var + EPS)          # LayerNorm, no affine
    xm = xn * (1.0 + scale[:, None, :]) + shift[:, None, :]
    return xm @ w_lin + b_lin


if __name__ == "__main__":
    key = jax.random.PRNGKey(0)
    kx, kc, k1, k2, k3, k4 = jax.random.split(key, 6)

    B, N, H, C = 2, 16, 32, 4                       # batch, tokens, hidden, out_channels
    x = jax.random.normal(kx, (B, N, H), jnp.float32)
    c = jax.random.normal(kc, (B, H), jnp.float32)

    # parameters in (in_features, out_features) layout (x @ W + b), equivalent
    # to PyTorch Linear's x @ W.T + b with W of shape (out, in)
    w_mod = jax.random.normal(k1, (H, 2 * H), jnp.float32) * 0.02
    b_mod = jax.random.normal(k2, (2 * H,), jnp.float32) * 0.01
    w_lin = jax.random.normal(k3, (H, C), jnp.float32) * 0.02
    b_lin = jax.random.normal(k4, (C,), jnp.float32) * 0.01

    # ---- f32 path: tight correctness check ----------------------------------
    out = final_layer(x, c, w_mod, b_mod, w_lin, b_lin)
    jax.block_until_ready(out)
    ref = _reference(x, c, w_mod, b_mod, w_lin, b_lin)
    assert out.shape == (B, N, C)
    assert jnp.allclose(out, ref, atol=1e-4, rtol=1e-4), "f32 mismatch vs reference"

    # ---- bf16 I/O path (the HBM-light fast path): loose smoke check ---------
    x_bf = x.astype(jnp.bfloat16)
    w_lin_bf = w_lin.astype(jnp.bfloat16)
    out_bf = final_layer(x_bf, c, w_mod, b_mod, w_lin_bf, b_lin)
    jax.block_until_ready(out_bf)
    ref_bf = _reference(x_bf, c, w_mod, b_mod, w_lin_bf, b_lin)
    assert out_bf.dtype == jnp.bfloat16 and out_bf.shape == (B, N, C)
    assert jnp.allclose(out_bf.astype(jnp.float32), ref_bf, atol=5e-2, rtol=5e-2), \
        "bf16 mismatch vs reference"

    print("KERNEL_OK")
</pallas_src>

<mosaic_0001>
module attributes {stable_mosaic.version = 11 : i64} {
  func.func @_final_layer_kernel(%arg0: i32, %arg1: i32, %arg2: memref<1x1x32xf32, #tpu.memory_space<vmem>>, %arg3: memref<1x1x32xf32, #tpu.memory_space<vmem>>, %arg4: memref<1x16x32xf32, #tpu.memory_space<vmem>>, %arg5: memref<32x128xf32, #tpu.memory_space<vmem>>, %arg6: memref<1x128xf32, #tpu.memory_space<vmem>>, %arg7: memref<1x16x128xf32, #tpu.memory_space<vmem>>) attributes {dimension_semantics = [#tpu.dimension_semantics<parallel>, #tpu.dimension_semantics<parallel>], iteration_bounds = array<i64: 2, 1>, scalar_prefetch = 0 : i64, scratch_operands = 0 : i64, tpu.core_type = #tpu.core_type<tc>, window_params = [{transform_indices = @transform_0, window_bounds = array<i64: 1, 1, 32>}, {transform_indices = @transform_1, window_bounds = array<i64: 1, 1, 32>}, {transform_indices = @transform_2, window_bounds = array<i64: 1, 16, 32>}, {pipeline_mode = #tpu.pipeline_mode<synchronous>, transform_indices = @transform_3, window_bounds = array<i64: 32, 128>}, {pipeline_mode = #tpu.pipeline_mode<synchronous>, transform_indices = @transform_4, window_bounds = array<i64: 1, 128>}, {transform_indices = @transform_5, window_bounds = array<i64: 1, 16, 128>}]} {
    %c0 = arith.constant 0 : index
    %c0_0 = arith.constant 0 : index
    %c0_1 = arith.constant 0 : index
    %0 = vector.load %arg4[%c0, %c0_0, %c0_1] : memref<1x16x32xf32, #tpu.memory_space<vmem>>, vector<1x16x32xf32>
    %1 = vector.shape_cast %0 : vector<1x16x32xf32> to vector<16x32xf32>
    %cst = arith.constant dense<0.000000e+00> : vector<16xf32>
    %2 = vector.multi_reduction <add>, %1, %cst [1] : vector<16x32xf32> to vector<16xf32>
    %3 = vector.shape_cast %2 : vector<16xf32> to vector<16x1xf32>
    %4 = arith.mulf %1, %1 : vector<16x32xf32>
    %cst_2 = arith.constant dense<0.000000e+00> : vector<16xf32>
    %5 = vector.multi_reduction <add>, %4, %cst_2 [1] : vector<16x32xf32> to vector<16xf32>
    %6 = vector.shape_cast %5 : vector<16xf32> to vector<16x1xf32>
    %cst_3 = arith.constant 3.125000e-02 : f32
    %7 = vector.broadcast %cst_3 : f32 to vector<16x1xf32>
    %8 = arith.mulf %3, %7 : vector<16x1xf32>
    %cst_4 = arith.constant 3.125000e-02 : f32
    %9 = vector.broadcast %cst_4 : f32 to vector<16x1xf32>
    %10 = arith.mulf %6, %9 : vector<16x1xf32>
    %11 = arith.mulf %8, %8 : vector<16x1xf32>
    %12 = arith.subf %10, %11 : vector<16x1xf32>
    %13 = vector.broadcast %8 : vector<16x1xf32> to vector<16x32xf32>
    %14 = arith.subf %1, %13 : vector<16x32xf32>
    %cst_5 = arith.constant 9.99999997E-7 : f32
    %15 = vector.broadcast %cst_5 : f32 to vector<16x1xf32>
    %16 = arith.addf %12, %15 : vector<16x1xf32>
    %17 = math.rsqrt %16 : vector<16x1xf32>
    %18 = vector.broadcast %17 : vector<16x1xf32> to vector<16x32xf32>
    %19 = arith.mulf %14, %18 : vector<16x32xf32>
    %c0_6 = arith.constant 0 : index
    %c0_7 = arith.constant 0 : index
    %c0_8 = arith.constant 0 : index
    %20 = vector.load %arg2[%c0_6, %c0_7, %c0_8] : memref<1x1x32xf32, #tpu.memory_space<vmem>>, vector<1x1x32xf32>
    %21 = vector.shape_cast %20 : vector<1x1x32xf32> to vector<1x32xf32>
    %c0_9 = arith.constant 0 : index
    %c0_10 = arith.constant 0 : index
    %c0_11 = arith.constant 0 : index
    %22 = vector.load %arg3[%c0_9, %c0_10, %c0_11] : memref<1x1x32xf32, #tpu.memory_space<vmem>>, vector<1x1x32xf32>
    %23 = vector.shape_cast %22 : vector<1x1x32xf32> to vector<1x32xf32>
    %cst_12 = arith.constant 1.000000e+00 : f32
    %24 = vector.broadcast %cst_12 : f32 to vector<1x32xf32>
    %25 = arith.addf %24, %23 : vector<1x32xf32>
    %26 = vector.broadcast %25 : vector<1x32xf32> to vector<16x32xf32>
    %27 = arith.mulf %19, %26 : vector<16x32xf32>
    %28 = vector.broadcast %21 : vector<1x32xf32> to vector<16x32xf32>
    %29 = arith.addf %27, %28 : vector<16x32xf32>
    %c0_13 = arith.constant 0 : index
    %c0_14 = arith.constant 0 : index
    %30 = vector.load %arg5[%c0_13, %c0_14] : memref<32x128xf32, #tpu.memory_space<vmem>>, vector<32x128xf32>
    %cst_15 = arith.constant dense<0.000000e+00> : vector<16x128xf32>
    %31 = tpu.matmul %29, %30, %cst_15 {dimension_numbers = #tpu.dot_dimension_numbers<[1], [0], [0], [1], [0, 0, 1, 1], [], []>} : vector<16x32xf32>, vector<32x128xf32>, vector<16x128xf32> -> vector<16x128xf32>
    %c0_16 = arith.constant 0 : index
    %c0_17 = arith.constant 0 : index
    %32 = vector.load %arg6[%c0_16, %c0_17] : memref<1x128xf32, #tpu.memory_space<vmem>>, vector<1x128xf32>
    %33 = vector.broadcast %32 : vector<1x128xf32> to vector<16x128xf32>
    %34 = arith.addf %31, %33 : vector<16x128xf32>
    %c0_18 = arith.constant 0 : index
    %c0_19 = arith.constant 0 : index
    %c0_20 = arith.constant 0 : index
    %35 = vector.load %arg7[%c0_18, %c0_19, %c0_20] : memref<1x16x128xf32, #tpu.memory_space<vmem>>, vector<1x16x128xf32>
    %36 = vector.shape_cast %35 : vector<1x16x128xf32> to vector<16x128xf32>
    %37 = vector.shape_cast %34 : vector<16x128xf32> to vector<1x16x128xf32>
    tpu.vector_store %arg7[%c0_18, %c0_19, %c0_20], %37 {strides = array<i32>} : memref<1x16x128xf32, #tpu.memory_space<vmem>>, vector<1x16x128xf32>,
    return
  }
  func.func @transform_0(%arg0: i32, %arg1: i32) -> (i32, i32, i32) {
    %c0_i32 = arith.constant 0 : i32
    %c0_i32_0 = arith.constant 0 : i32
    %c0_i32_1 = arith.constant 0 : i32
    return %arg0, %c0_i32, %c0_i32_0 : i32, i32, i32
  }
  func.func @transform_1(%arg0: i32, %arg1: i32) -> (i32, i32, i32) {
    %c0_i32 = arith.constant 0 : i32
    %c0_i32_0 = arith.constant 0 : i32
    %c0_i32_1 = arith.constant 0 : i32
    return %arg0, %c0_i32, %c0_i32_0 : i32, i32, i32
  }
  func.func @transform_2(%arg0: i32, %arg1: i32) -> (i32, i32, i32) {
    %c0_i32 = arith.constant 0 : i32
    %c0_i32_0 = arith.constant 0 : i32
    return %arg0, %arg1, %c0_i32 : i32, i32, i32
  }
  func.func @transform_3(%arg0: i32, %arg1: i32) -> (i32, i32) {
    %c0_i32 = arith.constant 0 : i32
    %c0_i32_0 = arith.constant 0 : i32
    %c0_i32_1 = arith.constant 0 : i32
    return %c0_i32, %c0_i32_0 : i32, i32
  }
  func.func @transform_4(%arg0: i32, %arg1: i32) -> (i32, i32) {
    %c0_i32 = arith.constant 0 : i32
    %c0_i32_0 = arith.constant 0 : i32
    %c0_i32_1 = arith.constant 0 : i32
    return %c0_i32, %c0_i32_0 : i32, i32
  }
  func.func @transform_5(%arg0: i32, %arg1: i32) -> (i32, i32, i32) {
    %c0_i32 = arith.constant 0 : i32
    %c0_i32_0 = arith.constant 0 : i32
    return %arg0, %arg1, %c0_i32 : i32, i32, i32
  }
}

</mosaic_0001>

<bundles_post_ra>
// kernel: tpu_custom_call.1
= control target key start
LH: loop header
LB: loop body
LE: loop exit
PB: predicated region body
PF: predicated region fallthrough
CT: control target
= control target key end

     0   :  { %s1250_s0 = inlined_call_operand.hbm [shape: f32[2,1,32], index: 0, kind: input, shape index: {}]   ;;  %s1251_s1 = inlined_call_operand.vmem [shape: f32[2,1,32], index: 1, kind: input, shape index: {}]   ;;  %s1252_s2 = inlined_call_operand.hbm [shape: f32[2,16,32], index: 2, kind: input, shape index: {}]   ;;  %s1253_s3 = inlined_call_operand.hbm [shape: f32[32,128], index: 3, kind: input, shape index: {}]   ;;  %s1254_s4 = inlined_call_operand.vmem [shape: f32[1,128], index: 4, kind: input, shape index: {}]   ;;  %s1255_s5 = inlined_call_operand.hbm [shape: f32[2,16,128], index: 5, kind: output, shape index: {}]  }
   0x1   :  { %1262 = sst [smem:[#allocation15_spill]] %s1253_s3 }
   0x2   :  { %10 = vsyncpa [#allocation3], 0 }
   0x3   :  { %12 = vsyncpa [#allocation3 + $0x1], 0 }
   0x4   :  { %13 = vsyncpa [#allocation6], 0 }
   0x5   :  { %15 = vsyncpa [#allocation6 + $0x1], 0 }
   0x6   :  { %16 = vsyncpa [#allocation4], 0 }
   0x7   :  { %18 = vsyncpa [#allocation4 + $0x1], 0  ;;  %s965_s18 = smov 0   ;;  %s967_s19 = smov 0  }
   0x8   :  { %s969_s20 = smov 0   ;;  %s971_s21 = smov 0  }
   0x9   :  { %s973_s22 = smov 0   ;;  %s975_s23 = smov 0  }
   0xa LB: > { %s996_s24 = sadd.s32 4294967295, %s925_s23   ;;  %s613_s25 = sadd.s32 4294967294, %s925_s23   ;;  %s925_s23 = sphi %s975_s23, %s24_s23   ;;  %s921_s22 = sphi %s973_s22, %s1287_s22   ;;  %s917_s21 = sphi %s971_s21, %s1286_s21   ;;  %s913_s20 = sphi %s969_s20, %s1285_s20   ;;  %s909_s19 = sphi %s967_s19, %s1284_s19   ;;  %s905_s18 = sphi %s965_s18, %s1283_s18  }
   0xb   : > { %p56_p0 = scmp.ne.s32.totalorder %s909_s19, %s905_s18  ;;  %p1256_p1 = scmp.eq.s32.totalorder %s996_s24, 0 }
   0xc   : > { %p184_p3 = scmp.eq.s32.totalorder %s613_s25, 1  ;;  %p614_p5 = scmp.ge.s32.totalorder %s925_s23, 1 }
   0xd   : > { %p1005_p4 = por %p1256_p1, %p56_p0  ;;  %p191_p7 = scmp.lt.s32.totalorder %s925_s23, 3 }
   0xe   : > { %p1010_p6 = por %p184_p3, %p56_p0  ;;  %s927_s29 = smov [#allocation7]  }
   0xf   : > { %s1263_s26 = scalar_select %p1005_p4, 1, 0 }
  0x10   : > { %s1264_s27 = scalar_select %p1010_p6, 1, 0 }
  0x11   : > { %p1015_p8 = pnand %p614_p5, %p191_p7  ;;  %s203_s30 = sshll.u32 %s927_s29, 4  ;;  %s204_s30 = int_to_ptr.vmem [resolvable:$true] %s203_s30 }
  0x12   : > { %s36_s7 = sadd.s32 1, %s921_s22  ;;  %s1267_s3 = sld [smem:[#allocation15_spill]] }
  0x13   : > { %s1265_s28 = scalar_select %p1015_p8, 1, 0 }
  0x14   : > { %p671_p9 = pneg %p1015_p8 }
  0x16   : > { %p1024_p11 = pnand %p671_p9, %p1256_p1 }
  0x18   : > { %s747_s10 = scalar_lea.hbm %s1267_s3, 512  ;;  %p749_p13 = pneg %p1024_p11 }
  0x19   : > { %p748_p12 = scmp.ne.s32.totalorder %s1267_s3, %s747_s10  ;;  %p754_p5 = scmp.lt.u32.totalorder %s747_s10, %s1267_s3 }
  0x1b   : > { %p750_p0 = pnand %p749_p13, %p748_p12 }
  0x1d   : > { %p751_p3 = pneg %p750_p0 }
  0x1f   : > { %p756_p7 = pnand %p754_p5, %p751_p3 }
  0x21   : > { %759 = shalt.err (!%p756_p7)
}
  0x22   : > { %s760_s15 = scalar_lea.vmem %s204_s30, 512  ;;  %p768_p2 = scmp.lt.s32.totalorder %s204_s30, %s204_s30 }
  0x23   : > { %p761_p9 = scmp.ne.s32.totalorder %s204_s30, %s760_s15  ;;  %p769_p6 = scmp.lt.s32.totalorder %s760_s15, %s760_s15 }
  0x25   : > { %p763_p10 = pnand %p761_p9, %p749_p13  ;;  %p770_p4 = por %p769_p6, %p768_p2 }
  0x27   : > { %p764_p1 = pneg %p763_p10 }
  0x29   : > { %p771_p8 = pnand %p770_p4, %p764_p1 }
  0x2b   : > { %774 = shalt.err (!%p771_p8)
}
  0x2c   : > { %s1259_s16 = smov 128   ;;  %s1260_s17 = smov 8  }
  0x2d   : > { %674 = dma.hbm_to_vmem [thread:$0]  (!%p1024_p11), %s1267_s3, 512, %s204_s30, [#allocation6], %s1259_s16, %s1259_s16, %s1260_s17  }
  0x2e   : > { %p38_p1 = scmp.ge.s32.totalorder %s36_s7, 2  ;;  %s43_s8 = sadd.s32 1, %s913_s20 }
  0x2f   : > { %p50_p2 = scmp.ne.s32.totalorder %s913_s20, %s909_s19  ;;  %p51_p4 = scmp.eq.s32.totalorder %s925_s23, 0 }
  0x30   : > { %s1289_s7 = smov (%p38_p1, %s36_s7), 0  ;;  %p1269_p8 = scmp.eq.s32.totalorder %s996_s24, 1 }
  0x31   : > { %1268 = sst [smem:[#allocation13_spill]] %s1289_s7  ;;  %p52_p6 = por %p51_p4, %p50_p2 }
  0x32   : > { %p1056_p10 = por %p1269_p8, %p50_p2  ;;  %s40_s6 = ssub.s32 %s921_s22, %s1289_s7 }
  0x33   : > { %p687_p12 = scmp.lt.s32.totalorder %s925_s23, 2  ;;  %p41_p13 = scmp.eq.s32.totalorder %s40_s6, 0 }
  0x34   : > { %s1064_s10 = sand.u32 1, %s913_s20   ;;  %s617_s11 = sshll.u32 %s921_s22, 4 }
  0x35   : > { %s1067_s30 = scalar_select %p41_p13, %s913_s20, %s43_s8  }
  0x36   : > { %s223_s12 = scalar_lea.vmem [#allocation2], %s1064_s10  ;;  %s1074_s25 = scalar_lea.hbm %s1250_s0, %s617_s11 }
  0x37   : > { %1271 = sst [smem:[#allocation14_spill]] %s1067_s30  ;;  %s230_s13 = sshll.u32 %s223_s12, 4  ;;  %s1076_s13 = int_to_ptr.vmem [resolvable:$true] %s230_s13 }
  0x38   : > { %p1078_p11 = pnand %p687_p12, %p52_p6  ;;  %s618_s8 = sshll.u32 %s1064_s10, 4 }
  0x39   : > { %s634_s6 = sshll.u32 %s921_s22, 8  ;;  %s1084_s12 = scalar_lea.vmem [#allocation5], %s618_s8 }
  0x3a   : > { %s256_s14 = sshll.u32 %s1084_s12, 4  ;;  %s221_s11 = scalar_lea.sflag [#allocation3], %s1064_s10  ;;  %s1115_s14 = int_to_ptr.vmem [resolvable:$true] %s256_s14 }
  0x3b   : > { %s775_s15 = scalar_lea.hbm %s1074_s25, 16  ;;  %p777_p3 = pneg %p1078_p11 }
  0x3c   : > { %p776_p0 = scmp.ne.s32.totalorder %s1074_s25, %s775_s15  ;;  %s780_s3 = scalar_lea.hbm %s1250_s0, 32 }
  0x3d   : > { %p781_p9 = scmp.lt.u32.totalorder %s1074_s25, %s1250_s0  ;;  %p782_p1 = scmp.lt.u32.totalorder %s780_s3, %s775_s15 }
  0x3e   : > { %p778_p5 = pnand %p777_p3, %p776_p0  ;;  %p784_p4 = scmp.lt.u32.totalorder %s775_s15, %s1074_s25 }
  0x3f   : > { %p783_p2 = por %p782_p1, %p781_p9 }
  0x40   : > { %p779_p7 = pneg %p778_p5 }
  0x41   : > { %p785_p6 = por %p784_p4, %p783_p2 }
  0x43   : > { %p786_p8 = pnand %p785_p6, %p779_p7 }
  0x45   : > { %789 = shalt.err (!%p786_p8)
}
  0x46   : > { %s790_s10 = scalar_lea.vmem %s1076_s13, 16  ;;  %s930_s16 = smov [#allocation2]  }
  0x47   : > { %p791_p12 = scmp.ne.s32.totalorder %s1076_s13, %s790_s10  ;;  %s795_s17 = sshll.u32 %s930_s16, 4  ;;  %s796_s17 = int_to_ptr.vmem [resolvable:$false] %s795_s17 }
  0x48   : > { %s797_s7 = scalar_lea.vmem %s796_s17, 32  ;;  %p798_p5 = scmp.lt.s32.totalorder %s1076_s13, %s796_s17 }
  0x49   : > { %p793_p13 = pnand %p791_p12, %p777_p3  ;;  %p799_p9 = scmp.lt.s32.totalorder %s797_s7, %s790_s10 }
  0x4b   : > { %p794_p0 = pneg %p793_p13  ;;  %p800_p1 = por %p799_p9, %p798_p5 }
  0x4d   : > { %p801_p2 = pnand %p800_p1, %p794_p0 }
  0x4f   : > { %804 = shalt.err (!%p801_p2)
}
  0x50   : > { %678 = dma.hbm_to_vmem [thread:$0]  (!%p1078_p11), %s1074_s25, 16, %s1076_s13, %s221_s11  }
  0x51   : > { %s243_s3 = sand.u32 1, %s925_s23   ;;  %s1123_s15 = scalar_lea.hbm %s1252_s2, %s634_s6 }
  0x52   : > { %s1125_s10 = scalar_lea.sflag [#allocation6], %s243_s3  ;;  %s805_s16 = scalar_lea.hbm %s1123_s15, 256 }
  0x53   : > { %p806_p7 = scmp.ne.s32.totalorder %s1123_s15, %s805_s16  ;;  %s810_s12 = scalar_lea.hbm %s1252_s2, 512 }
  0x54   : > { %p811_p8 = scmp.lt.u32.totalorder %s1123_s15, %s1252_s2  ;;  %p812_p12 = scmp.lt.u32.totalorder %s810_s12, %s805_s16 }
  0x55   : > { %p808_p4 = pnand %p806_p7, %p777_p3  ;;  %p814_p0 = scmp.lt.u32.totalorder %s805_s16, %s1123_s15 }
  0x56   : > { %p813_p13 = por %p812_p12, %p811_p8 }
  0x57   : > { %p809_p6 = pneg %p808_p4 }
  0x58   : > { %p815_p5 = por %p814_p0, %p813_p13 }
  0x5a   : > { %p816_p9 = pnand %p815_p5, %p809_p6 }
  0x5c   : > { %819 = shalt.err (!%p816_p9)
}
  0x5d   : > { %s820_s6 = scalar_lea.vmem %s1115_s14, 256  ;;  %s931_s7 = smov [#allocation5]  }
  0x5e   : > { %p821_p1 = scmp.ne.s32.totalorder %s1115_s14, %s820_s6  ;;  %s825_s3 = sshll.u32 %s931_s7, 4  ;;  %s826_s3 = int_to_ptr.vmem [resolvable:$false] %s825_s3 }
  0x5f   : > { %s827_s30 = scalar_lea.vmem %s826_s3, 512  ;;  %p828_p4 = scmp.lt.s32.totalorder %s1115_s14, %s826_s3 }
  0x60   : > { %p823_p2 = pnand %p821_p1, %p777_p3  ;;  %p829_p8 = scmp.lt.s32.totalorder %s827_s30, %s820_s6 }
  0x62   : > { %p824_p7 = pneg %p823_p2  ;;  %p830_p12 = por %p829_p8, %p828_p4 }
  0x64   : > { %p831_p13 = pnand %p830_p12, %p824_p7 }
  0x66   : > { %834 = shalt.err (!%p831_p13)
}
  0x67   : > { %s1273_s8 = smov 8   ;;  %s1274_s16 = smov 128  }
  0x68   : > { %681 = dma.hbm_to_vmem [thread:$0]  (!%p1078_p11), %s1123_s15, 256, %s1115_s14, %s1125_s10, %s1274_s16, %s1274_s16, %s1273_s8  }
  0x69   : > { %p1275_p3 = scmp.ne.s32.totalorder %s1265_s28, 0 }
  0x6a   : > { %s1157_s13 = sand.u32 (!%p1275_p3), 1, %s909_s19   ;;  %p1276_p6 = scmp.ne.s32.totalorder (!%p1275_p3), %s1263_s26, 0 }
  0x6b   : > { %268 = sbr.rel (%p1275_p3) target bundleno = 524 (0x20c), region = 40  ;;  %s271_s25 = scalar_lea.sflag (!%p1275_p3), [#allocation3], %s1157_s13 }
  0x6c   : > { %s273_s12 = scalar_lea.vmem (!%p1275_p3), [#allocation2], %s1157_s13 }
  0x72   : > { %888 = dma.done.wait (%p1276_p6), %s271_s25, 16  }
  0x73   : > { %890 = vsyncadd (%p1276_p6), %s271_s25, 4294967280  ;;  %s278_s29 = sand.u32 1, %s996_s24   ;;  %s622_s28 = sshll.u32 %s1157_s13, 4 }
  0x74   : > { %s279_s14 = scalar_lea.sflag [#allocation6], %s278_s29  ;;  %s282_s15 = scalar_lea.vmem [#allocation5], %s622_s28 }
  0x75   : > { %892 = dma.done.wait (%p1276_p6), %s279_s14, 256  }
  0x76   : > { %894 = vsyncadd (%p1276_p6), %s279_s14, 4294967040  ;;  %p1277_p11 = scmp.eq.s32.totalorder %s996_s24, 0 }
  0x78   : > { %896 = dma.done.wait (%p1277_p11), [#allocation6], 512   ;;  %p1278_p0 = pmov %p1277_p11 }
  0x79   : > { %vm327_vm0 = vcmask 261120   ;;  %v325_v0 = vld [vmem:[%s282_s15] sm:$0xff]  ;;  %v326_v1 = vld [vmem:[%s282_s15 + $0x8] sm:$0xff]  ;;  %p320_p5 = scmp.lt.s32.totalorder %s917_s21, 1  ;;  %v362_v23 = vlaneseq  ;;  %s319_s17 = scalar_lea.vmem [#allocation8], %s622_s28 }
  0x7a   : > { %898 = vsyncadd (%p1278_p0), [#allocation6], 4294966784  ;;  %v328_v2 = vsel %vm327_vm0, %v325_v0, 0.0  ;;  %v334_v3 = vmul.f32 %v325_v0, %v325_v0  ;;  %v335_v4 = vmul.f32 %v326_v1, %v326_v1  ;;  %v331_v6 = vsel %vm327_vm0, %v326_v1, 0.0  ;;  %v377_v8 = vld [vmem:[#allocation7] sm:$0xff]  ;;  %v378_v9 = vld [vmem:[#allocation7 + $0x8] sm:$0xff] }
  0x7b   : > { %329 = vadd.xlane.f32.xlu0 %v328_v2  ;;  %v379_v10 = vld [vmem:[#allocation7 + $0x10] sm:$0xff]  ;;  %v653_v11 = vpack.c.bf16 %v378_v9, %v377_v8  ;;  %v380_v12 = vld [vmem:[#allocation7 + $0x18] sm:$0xff]  ;;  %s321_s24 = scalar_select %p320_p5, %s917_s21, 1  ;;  %v363_v28 = vshrl.u32 %v362_v23, 7 }
  0x7c   : > { %v336_v5 = vsel %vm327_vm0, %v334_v3, 0.0  ;;  %v339_v7 = vsel %vm327_vm0, %v335_v4, 0.0  ;;  %v657_v13 = vpack.c.bf16 %v380_v12, %v379_v10  ;;  %v625_v37 = vld [vmem:[%s273_s12] ss:$0 sm:$0xff]  ;;  %s487_s6 = sshll.u32 %s319_s17, 4  ;;  %s635_s30 = sshll.u32 %s917_s21, 8  ;;  %s1196_s6 = int_to_ptr.vmem [resolvable:$true] %s487_s6 }
  0x7d   : > { %337 = vadd.xlane.f32.xlu1 %v336_v5  ;;  %654 = vmatprep.subr.bf16.mxu0 %v653_v11  ;;  %s322_s11 = scalar_lea.vmem %s1251_s1, %s321_s24  ;;  %v364_v32 = vsub.s32 0, %v363_v28  ;;  %v626_v45 = vld [vmem:[%s1254_s4] ss:$0 sm:$0xff]  ;;  %s1201_s25 = scalar_lea.hbm %s1255_s5, %s635_s30 }
  0x7e   : > { %656 = vmatpush3.bf16.msra.mxu0 %v653_v11  ;;  %v359_v30 = vld [vmem:[%s322_s11] sm:$0x1]  ;;  %s472_s12 = scalar_lea.sflag [#allocation4], %s1157_s13  ;;  %s835_s29 = scalar_lea.vmem %s1196_s6, 256 }
  0x7f   : > { %332 = vadd.xlane.f32.xlu0 %v331_v6  ;;  %658 = vmatprep.subr.bf16.mxu0 %v657_v13  ;;  %v360_v31 = vadd.f32 1.0, %v359_v30  ;;  %p836_p9 = scmp.ne.s32.totalorder %s1196_s6, %s835_s29  ;;  %s932_s21 = smov [#allocation8]  }
  0x80   : > { %s839_s28 = sshll.u32 %s932_s21, 4  ;;  %s840_s28 = int_to_ptr.vmem [resolvable:$false] %s839_s28 }
  0x81   : > { %340 = vadd.xlane.f32.xlu1 %v339_v7  ;;  %v365_v34 = vrot.slane %v360_v31, %v364_v32  ;;  %p837_p1 = pnand %p836_p9, %p1056_p10  ;;  %s841_s14 = scalar_lea.vmem %s840_s28, 512 }
  0x82   : > { %660 = vmatpush3.bf16.msra.mxu0 %v657_v13  ;;  %p842_p7 = scmp.lt.s32.totalorder %s1196_s6, %s840_s28  ;;  %p843_p4 = scmp.lt.s32.totalorder %s841_s14, %s835_s29 }
  0x83   : > { %p838_p2 = pneg %p837_p1 }
  0x84   : > { %p844_p8 = por %p843_p4, %p842_p7 }
  0x86   : > { %p845_p12 = pnand %p844_p8, %p838_p2 }
 0x108   : > { %v330_v14 = vpop.xlane.xlu0 %329 }
 0x109   : > { %v342_v15 = vmul.f32 0.03125, %v330_v14 }
 0x10a   : > { %v338_v16 = vpop.xlane.xlu1 %337 }
 0x10b   : > { %v346_v17 = vmul.f32 %v342_v15, %v342_v15  ;;  %v344_v18 = vmul.f32 0.03125, %v338_v16  ;;  %v350_v33 = vsub.f32 %v325_v0, %v342_v15 }
 0x10c   : > { %v333_v19 = vpop.xlane.xlu0 %332 }
 0x10d   : > { %v348_v20 = vsub.f32 %v344_v18, %v346_v17  ;;  %v343_v21 = vmul.f32 0.03125, %v333_v19 }
 0x10e   : > { %v341_v22 = vpop.xlane.xlu1 %340 }
 0x10f   : > { %v352_v24 = vadd.f32 1e-06, %v348_v20  ;;  %v347_v25 = vmul.f32 %v343_v21, %v343_v21  ;;  %v345_v26 = vmul.f32 0.03125, %v341_v22  ;;  %v351_v38 = vsub.f32 %v326_v1, %v343_v21 }
 0x111   : > { %743 = vrsqrt.f32 %v352_v24  ;;  %v349_v27 = vsub.f32 %v345_v26, %v347_v25 }
 0x113   : > { %v353_v29 = vadd.f32 1e-06, %v349_v27 }
 0x115   : > { %745 = vrsqrt.f32 %v353_v29 }
 0x11b   : > { %v744_v35 = vpop.eup %743 }
 0x11c   : > { %v356_v36 = vmul.f32 %v744_v35, %v350_v33 }
 0x11e   : > { %v367_v39 = vmul.f32 %v365_v34, %v356_v36 }
 0x11f   : > { %v746_v40 = vpop.eup %745 }
 0x120   : > { %v357_v41 = vmul.f32 %v746_v40, %v351_v38  ;;  %v375_v42 = vadd.f32 %v625_v37, %v367_v39 }
 0x122   : > { %v368_v43 = vmul.f32 %v365_v34, %v357_v41  ;;  %650 = vmatprep.mubr.msk.f32.mxu0 %vm327_vm0, %v375_v42 }
 0x124   : > { %v376_v44 = vadd.f32 %v625_v37, %v368_v43 }
 0x126   : > { %651 = vmatmul.mubr.msk.f32.vlgmr.msra.gmra.mrb[0].mxu0 %vm327_vm0, %v376_v44 }
 0x1f9   : > { %v652_v46 = vpop.f32.mrb[0].mxu0 }
 0x1fa   : > { %v466_v47 = vadd.f32 %v652_v46, %v626_v45  ;;  %v460_v48 = vpop.f32.mrb[1].mxu0 }
 0x1fb   : > { %v461_v49 = vadd.f32 %v626_v45, %v460_v48 }
 0x1fc   : > { %470 = vst [vmem:[%s319_s17 + $0x8] sm:$0xff] %v466_v47 }
 0x1fd   : > { %469 = vst [vmem:[%s319_s17] sm:$0xff] %v461_v49 }
 0x1fe   : > { %848 = shalt.err (!%p845_p12)
}
 0x1ff   : > { %s849_s15 = scalar_lea.hbm %s1201_s25, 256  ;;  %s853_s10 = scalar_lea.hbm %s1255_s5, 512 }
 0x200   : > { %p850_p13 = scmp.ne.s32.totalorder %s1201_s25, %s849_s15  ;;  %p854_p11 = scmp.lt.u32.totalorder %s1201_s25, %s1255_s5 }
 0x201   : > { %p855_p0 = scmp.lt.u32.totalorder %s853_s10, %s849_s15  ;;  %p857_p9 = scmp.lt.u32.totalorder %s849_s15, %s1201_s25 }
 0x202   : > { %p851_p3 = pnand %p850_p13, %p1056_p10 }
 0x203   : > { %p856_p5 = por %p855_p0, %p854_p11 }
 0x204   : > { %p852_p6 = pneg %p851_p3 }
 0x205   : > { %p858_p1 = por %p857_p9, %p856_p5 }
 0x207   : > { %p859_p2 = pnand %p858_p1, %p852_p6 }
 0x209   : > { %862 = shalt.err (!%p859_p2)
}
 0x20a   : > { %s933_s7 = smov 128   ;;  %s934_s3 = smov 8  }
 0x20b   : > { %669 = dma.vmem_to_hbm [thread:$0]  (%p1056_p10), %s1196_s6, 256, %s1201_s25, %s472_s12, %s933_s7, %s933_s7, %s934_s3  }
 0x20c PF: > { %s502_s30 = sand.u32 1, %s905_s18   ;;  %p1279_p7 = scmp.ne.s32.totalorder %s1264_s27, 0 }
 0x20d   : > { %p1280_p4 = scmp.ge.s32.totalorder %s925_s23, 2  ;;  %s503_s8 = scalar_lea.sflag [#allocation4], %s502_s30 }
 0x20f   : > { %p683_p8 = pnand %p1280_p4, %p1279_p7 }
 0x211   : > { %900 = dma.done.wait (!%p683_p8), %s503_s8, 256  }
 0x212   : > { %902 = vsyncadd (!%p683_p8), %s503_s8, 4294967040  ;;  %s24_s23 = sadd.s32 1, %s925_s23   ;;  %s1281_s16 = sld [smem:[#allocation14_spill]] }
 0x213   : > { %p21_p12 = scmp.ge.s32.totalorder %s24_s23, 4   ;;  %s1282_s9 = sld [smem:[#allocation13_spill]] }
 0x214   : > { %s1283_s18 = smov %s909_s19  ;;  %s1284_s19 = smov %s913_s20 }
 0x215   : > { %s1286_s21 = smov %s921_s22  ;;  %23 = sbr.rel (!%p21_p12) target bundleno = 10 (0xa), region = 105 }
 0x218   : > { %s1285_s20 = smov %s1281_s16 }
 0x219   : > { %s1287_s22 = smov %s1282_s9 }
 0x21c   :  { %508 = vsyncpa [#allocation3], 1 }
 0x21d   :  { %510 = vsyncpa [#allocation3 + $0x1], 1 }
 0x21e   :  { %511 = vsyncpa [#allocation6], 1 }
 0x21f   :  { %513 = vsyncpa [#allocation6 + $0x1], 1 }
 0x220   :  { %514 = vsyncpa [#allocation4], 1 }
 0x221   :  { %516 = vsyncpa [#allocation4 + $0x1], 1 }

</bundles_post_ra>
